<compile_context>
chip_gen: v7x
topology: tpu7x:2x2x1
jax: 0.10.0
libtpu: 0.0.40
codegen_flags: <defaults>
</compile_context>

<pallas_src>
import functools
import math

import numpy as np

import jax
import jax.numpy as jnp
from jax import lax
from jax.experimental import pallas as pl
from jax.experimental.pallas import tpu as pltpu


def _round_up(x, m):
    return ((x + m - 1) // m) * m


def _gelu_exact(x):
    # PyTorch nn.GELU() default: exact erf-based GELU.
    return 0.5 * x * (1.0 + lax.erf(x * (1.0 / math.sqrt(2.0))))


def _pose_embedder_kernel(x_ref, w0_ref, b0_ref, w1_ref, b1_ref, w2_ref, b2_ref,
                          o_ref, *, approximate_gelu):
    # tanh-GELU lowers to the EUP (free bundle slot); erf-GELU is a VPU polynomial.
    gelu = (functools.partial(jax.nn.gelu, approximate=True)
            if approximate_gelu else _gelu_exact)
    mm_dtype = w0_ref.dtype  # matmul input dtype; accumulation & elementwise stay f32
    # Layer 1: Linear -> (Dropout = identity) -> GELU
    h = jnp.dot(x_ref[...], w0_ref[...], preferred_element_type=jnp.float32)
    h = gelu(h + b0_ref[...].astype(jnp.float32))
    # Layer 2
    h = jnp.dot(h.astype(mm_dtype), w1_ref[...], preferred_element_type=jnp.float32)
    h = gelu(h + b1_ref[...].astype(jnp.float32))
    # Layer 3
    h = jnp.dot(h.astype(mm_dtype), w2_ref[...], preferred_element_type=jnp.float32)
    h = gelu(h + b2_ref[...].astype(jnp.float32))
    o_ref[...] = h.astype(o_ref.dtype)


def pose_embedder_forward(x, params, *, tile_m=16384, approximate_gelu=True,
                          matmul_dtype=None, out_dtype=None):
    """x: (B, S, pose_dim). params: dict of w0,b0,w1,b1,w2,b2 (3 layers).

    Options:
      approximate_gelu: True (default) = tanh GELU on the EUP; False = exact erf
        GELU (PyTorch nn.GELU() default semantics).
      matmul_dtype: e.g. jnp.bfloat16 to halve x/weight HBM traffic (f32 accumulate).
      out_dtype: e.g. jnp.bfloat16 to halve the (dominant) output store stream.
    """
    B, S, pose_dim = x.shape
    E = params["w0"].shape[1]
    M = B * S
    out_dtype = np.dtype(x.dtype) if out_dtype is None else np.dtype(out_dtype)

    # Lane-dense row packing: `pack` consecutive rows -> one 128-wide super-row.
    pack = 128 // E if (E < 128 and 128 % E == 0) else 1
    min_tile = 8 * pack  # sublane(8) x packing granularity, in original rows

    # --- Tile / grid selection (in packed-row space) ---------------------------
    Mr0 = _round_up(pl.cdiv(M, pack), 8)                  # packed rows needed
    tile_r = max(8, _round_up(tile_m, min_tile) // pack)  # row-tile cap (packed rows)
    tile_r = min(tile_r, Mr0)
    grid_len = pl.cdiv(Mr0, tile_r)
    # v7x has two TensorCores: keep the grid even and >= 4 when the problem is big
    # enough so the "parallel" axis splits across both cores and stays pipelined.
    if Mr0 >= 4 * 64:
        grid_len = max(grid_len, 4)
        if grid_len % 2:
            grid_len += 1
    elif Mr0 >= 2 * 32:
        grid_len = max(grid_len, 2)
    tile_r = _round_up(pl.cdiv(Mr0, grid_len), 8)
    grid_len = pl.cdiv(Mr0, tile_r)
    Mr = grid_len * tile_r        # packed rows actually processed (tile-aligned)
    Mp = Mr * pack                # padded original rows (pad is small, often zero)

    x2d = x.reshape(M, pose_dim)
    if Mp != M:
        # Fine-grained pad (min-tile / coverage granularity); usually a no-op.
        x2d = jnp.pad(x2d, ((0, Mp - M), (0, 0)))

    # Block-diagonal weight expansion so per-row math is identical after packing.
    Din = pack * pose_dim
    Dh = pack * E
    eye = jnp.eye(pack, dtype=params["w0"].dtype)
    packw = lambda w: jnp.kron(eye, w)           # (pack*fin, pack*fout), block diag
    packb = lambda b: jnp.tile(b, (1, pack))     # (1, pack*fout)
    x_packed = x2d.reshape(Mr, Din)
    w0, w1, w2 = packw(params["w0"]), packw(params["w1"]), packw(params["w2"])
    b0, b1, b2 = packb(params["b0"]), packb(params["b1"]), packb(params["b2"])

    if matmul_dtype is not None:
        # bf16 matmul inputs: halves x/weight HBM traffic; f32 accumulation and f32
        # bias/GELU preserved in-kernel (also keeps v5e's VPU on its native f32 path).
        x_packed = x_packed.astype(matmul_dtype)
        w0, w1, w2 = (w.astype(matmul_dtype) for w in (w0, w1, w2))

    in_bytes = np.dtype(x_packed.dtype).itemsize
    w_bytes = np.dtype(w0.dtype).itemsize
    out_bytes = out_dtype.itemsize
    bias_bytes = np.dtype(b0.dtype).itemsize
    weight_bytes = (Din * Dh + 2 * Dh * Dh) * w_bytes + 3 * Dh * bias_bytes

    # Advisory cost estimate with the actual element sizes and processed row count.
    cost = pl.CostEstimate(
        flops=2 * Mr * (Din * Dh + 2 * Dh * Dh),
        transcendentals=3 * Mr * Dh,
        bytes_accessed=Mr * Din * in_bytes + Mr * Dh * out_bytes + weight_bytes,
    )

    # Explicit VMEM budget: double-buffered x/out tiles + resident weights + f32
    # intermediates, with 2x headroom, capped at 32 MiB (safe on v5e/v6e/v7x).
    vmem_est = (2 * tile_r * (Din * in_bytes + Dh * out_bytes)
                + 2 * weight_bytes
                + 3 * tile_r * Dh * 4)
    vmem_limit = int(min(max(2 * vmem_est, 16 * 1024 * 1024), 32 * 1024 * 1024))

    full2d = lambda shape: pl.BlockSpec(shape, lambda i: (0, 0))
    kernel = functools.partial(_pose_embedder_kernel, approximate_gelu=approximate_gelu)

    out_packed = pl.pallas_call(
        kernel,
        out_shape=jax.ShapeDtypeStruct((Mr, Dh), out_dtype),
        grid_spec=pltpu.PrefetchScalarGridSpec(
            num_scalar_prefetch=0,
            grid=(grid_len,),
            in_specs=[
                pl.BlockSpec((tile_r, Din), lambda i: (i, 0)),  # x tile (lane-dense)
                full2d((Din, Dh)),  # w0 (constant index_map -> DMA'd once, VMEM-resident)
                full2d((1, Dh)),    # b0
                full2d((Dh, Dh)),   # w1
                full2d((1, Dh)),    # b1
                full2d((Dh, Dh)),   # w2
                full2d((1, Dh)),    # b2
            ],
            out_specs=pl.BlockSpec((tile_r, Dh), lambda i: (i, 0)),
        ),
        compiler_params=pltpu.CompilerParams(
            dimension_semantics=("parallel",),
            vmem_limit_bytes=vmem_limit),
        cost_estimate=cost,
    )(x_packed, w0, b0, w1, b1, w2, b2)

    out2d = out_packed.reshape(Mp, E)
    if Mp != M:
        # TODO(synk): fuse this slice into the downstream consumer when M is tile-unaligned.
        out2d = out2d[:M]
    return out2d.reshape(B, S, E)


def init_params(key, pose_dim, pose_embed_dim, n_layers=3, dtype=jnp.float32):
    """Deterministic PyTorch-style Linear init: U(-1/sqrt(fan_in), 1/sqrt(fan_in))."""
    assert n_layers == 3, "this script hard-codes pose_embedder_n_layers = 3"
    params = {}
    dims = [(pose_dim, pose_embed_dim),
            (pose_embed_dim, pose_embed_dim),
            (pose_embed_dim, pose_embed_dim)]
    for idx, (fin, fout) in enumerate(dims):
        key, kw, kb = jax.random.split(key, 3)
        bound = 1.0 / math.sqrt(fin)
        params[f"w{idx}"] = jax.random.uniform(kw, (fin, fout), dtype, -bound, bound)
        params[f"b{idx}"] = jax.random.uniform(kb, (1, fout), dtype, -bound, bound)
    return params


def _reference_forward(x, params, *, approximate=False):
    gelu = (functools.partial(jax.nn.gelu, approximate=True)
            if approximate else _gelu_exact)
    h = x
    for idx in range(3):
        h = h @ params[f"w{idx}"] + params[f"b{idx}"]
        h = gelu(h)
    return h


if __name__ == "__main__":
    # Small shapes implied by the module: pose vectors of dim 16 embedded to 32.
    B, S, POSE_DIM, POSE_EMBED_DIM = 2, 8, 16, 32

    key = jax.random.PRNGKey(0)
    key, kx = jax.random.split(key)
    x = jax.random.normal(kx, (B, S, POSE_DIM), dtype=jnp.float32)
    params = init_params(key, POSE_DIM, POSE_EMBED_DIM, n_layers=3)

    # 1) Default (fast) path: tanh-GELU on the EUP, f32 I/O.
    out = jax.jit(pose_embedder_forward)(x, params)
    jax.block_until_ready(out)
    ref_tanh = _reference_forward(x, params, approximate=True)
    assert out.shape == (B, S, POSE_EMBED_DIM)
    assert jnp.allclose(out, ref_tanh, atol=2e-5, rtol=2e-5), "mismatch vs tanh-GELU reference"

    # 2) Exact PyTorch nn.GELU() semantics path: erf-GELU, f32.
    out_exact = jax.jit(functools.partial(pose_embedder_forward,
                                          approximate_gelu=False))(x, params)
    jax.block_until_ready(out_exact)
    ref_erf = _reference_forward(x, params, approximate=False)
    assert jnp.allclose(out_exact, ref_erf, atol=2e-5, rtol=2e-5), "mismatch vs erf-GELU reference"

    # 3) bf16-I/O option recommended for mem-bound v5e/v6e/v7x deployments.
    out_bf16 = jax.jit(functools.partial(pose_embedder_forward,
                                         matmul_dtype=jnp.bfloat16,
                                         out_dtype=jnp.bfloat16))(x, params)
    jax.block_until_ready(out_bf16)
    assert out_bf16.dtype == jnp.bfloat16
    assert jnp.allclose(out_bf16.astype(jnp.float32), ref_tanh, atol=1e-1, rtol=1e-1), \
        "bf16 path mismatch vs reference"

    print("KERNEL_OK")
</pallas_src>

<mosaic_0001>
module attributes {stable_mosaic.version = 11 : i64} {
  func.func @_pose_embedder_kernel(%arg0: i32, %arg1: memref<8x64xf32, #tpu.memory_space<vmem>>, %arg2: memref<64x128xf32, #tpu.memory_space<vmem>>, %arg3: memref<1x128xf32, #tpu.memory_space<vmem>>, %arg4: memref<128x128xf32, #tpu.memory_space<vmem>>, %arg5: memref<1x128xf32, #tpu.memory_space<vmem>>, %arg6: memref<128x128xf32, #tpu.memory_space<vmem>>, %arg7: memref<1x128xf32, #tpu.memory_space<vmem>>, %arg8: memref<8x128xf32, #tpu.memory_space<vmem>>) attributes {dimension_semantics = [#tpu.dimension_semantics<parallel>], iteration_bounds = array<i64: 1>, scalar_prefetch = 0 : i64, scratch_operands = 0 : i64, tpu.core_type = #tpu.core_type<tc>, window_params = [{transform_indices = @transform_0, window_bounds = array<i64: 8, 64>}, {pipeline_mode = #tpu.pipeline_mode<synchronous>, transform_indices = @transform_1, window_bounds = array<i64: 64, 128>}, {pipeline_mode = #tpu.pipeline_mode<synchronous>, transform_indices = @transform_2, window_bounds = array<i64: 1, 128>}, {pipeline_mode = #tpu.pipeline_mode<synchronous>, transform_indices = @transform_3, window_bounds = array<i64: 128, 128>}, {pipeline_mode = #tpu.pipeline_mode<synchronous>, transform_indices = @transform_4, window_bounds = array<i64: 1, 128>}, {pipeline_mode = #tpu.pipeline_mode<synchronous>, transform_indices = @transform_5, window_bounds = array<i64: 128, 128>}, {pipeline_mode = #tpu.pipeline_mode<synchronous>, transform_indices = @transform_6, window_bounds = array<i64: 1, 128>}, {transform_indices = @transform_7, window_bounds = array<i64: 8, 128>}]} {
    %c0 = arith.constant 0 : index
    %c0_0 = arith.constant 0 : index
    %0 = vector.load %arg1[%c0, %c0_0] : memref<8x64xf32, #tpu.memory_space<vmem>>, vector<8x64xf32>
    %c0_1 = arith.constant 0 : index
    %c0_2 = arith.constant 0 : index
    %1 = vector.load %arg2[%c0_1, %c0_2] : memref<64x128xf32, #tpu.memory_space<vmem>>, vector<64x128xf32>
    %cst = arith.constant dense<0.000000e+00> : vector<8x128xf32>
    %2 = tpu.matmul %0, %1, %cst {dimension_numbers = #tpu.dot_dimension_numbers<[1], [0], [0], [1], [0, 0, 1, 1], [], []>} : vector<8x64xf32>, vector<64x128xf32>, vector<8x128xf32> -> vector<8x128xf32>
    %c0_3 = arith.constant 0 : index
    %c0_4 = arith.constant 0 : index
    %3 = vector.load %arg3[%c0_3, %c0_4] : memref<1x128xf32, #tpu.memory_space<vmem>>, vector<1x128xf32>
    %4 = vector.broadcast %3 : vector<1x128xf32> to vector<8x128xf32>
    %5 = arith.addf %2, %4 : vector<8x128xf32>
    %6 = arith.mulf %5, %5 : vector<8x128xf32>
    %7 = arith.mulf %5, %6 : vector<8x128xf32>
    %cst_5 = arith.constant 4.471500e-02 : f32
    %8 = vector.broadcast %cst_5 : f32 to vector<8x128xf32>
    %9 = arith.mulf %8, %7 : vector<8x128xf32>
    %10 = arith.addf %5, %9 : vector<8x128xf32>
    %cst_6 = arith.constant 0.797884583 : f32
    %11 = vector.broadcast %cst_6 : f32 to vector<8x128xf32>
    %12 = arith.mulf %11, %10 : vector<8x128xf32>
    %13 = math.tanh %12 : vector<8x128xf32>
    %cst_7 = arith.constant 1.000000e+00 : f32
    %14 = vector.broadcast %cst_7 : f32 to vector<8x128xf32>
    %15 = arith.addf %14, %13 : vector<8x128xf32>
    %cst_8 = arith.constant 5.000000e-01 : f32
    %16 = vector.broadcast %cst_8 : f32 to vector<8x128xf32>
    %17 = arith.mulf %16, %15 : vector<8x128xf32>
    %18 = arith.mulf %5, %17 : vector<8x128xf32>
    %c0_9 = arith.constant 0 : index
    %c0_10 = arith.constant 0 : index
    %19 = vector.load %arg4[%c0_9, %c0_10] : memref<128x128xf32, #tpu.memory_space<vmem>>, vector<128x128xf32>
    %cst_11 = arith.constant dense<0.000000e+00> : vector<8x128xf32>
    %20 = tpu.matmul %18, %19, %cst_11 {dimension_numbers = #tpu.dot_dimension_numbers<[1], [0], [0], [1], [0, 0, 1, 1], [], []>} : vector<8x128xf32>, vector<128x128xf32>, vector<8x128xf32> -> vector<8x128xf32>
    %c0_12 = arith.constant 0 : index
    %c0_13 = arith.constant 0 : index
    %21 = vector.load %arg5[%c0_12, %c0_13] : memref<1x128xf32, #tpu.memory_space<vmem>>, vector<1x128xf32>
    %22 = vector.broadcast %21 : vector<1x128xf32> to vector<8x128xf32>
    %23 = arith.addf %20, %22 : vector<8x128xf32>
    %24 = arith.mulf %23, %23 : vector<8x128xf32>
    %25 = arith.mulf %23, %24 : vector<8x128xf32>
    %cst_14 = arith.constant 4.471500e-02 : f32
    %26 = vector.broadcast %cst_14 : f32 to vector<8x128xf32>
    %27 = arith.mulf %26, %25 : vector<8x128xf32>
    %28 = arith.addf %23, %27 : vector<8x128xf32>
    %cst_15 = arith.constant 0.797884583 : f32
    %29 = vector.broadcast %cst_15 : f32 to vector<8x128xf32>
    %30 = arith.mulf %29, %28 : vector<8x128xf32>
    %31 = math.tanh %30 : vector<8x128xf32>
    %cst_16 = arith.constant 1.000000e+00 : f32
    %32 = vector.broadcast %cst_16 : f32 to vector<8x128xf32>
    %33 = arith.addf %32, %31 : vector<8x128xf32>
    %cst_17 = arith.constant 5.000000e-01 : f32
    %34 = vector.broadcast %cst_17 : f32 to vector<8x128xf32>
    %35 = arith.mulf %34, %33 : vector<8x128xf32>
    %36 = arith.mulf %23, %35 : vector<8x128xf32>
    %c0_18 = arith.constant 0 : index
    %c0_19 = arith.constant 0 : index
    %37 = vector.load %arg6[%c0_18, %c0_19] : memref<128x128xf32, #tpu.memory_space<vmem>>, vector<128x128xf32>
    %cst_20 = arith.constant dense<0.000000e+00> : vector<8x128xf32>
    %38 = tpu.matmul %36, %37, %cst_20 {dimension_numbers = #tpu.dot_dimension_numbers<[1], [0], [0], [1], [0, 0, 1, 1], [], []>} : vector<8x128xf32>, vector<128x128xf32>, vector<8x128xf32> -> vector<8x128xf32>
    %c0_21 = arith.constant 0 : index
    %c0_22 = arith.constant 0 : index
    %39 = vector.load %arg7[%c0_21, %c0_22] : memref<1x128xf32, #tpu.memory_space<vmem>>, vector<1x128xf32>
    %40 = vector.broadcast %39 : vector<1x128xf32> to vector<8x128xf32>
    %41 = arith.addf %38, %40 : vector<8x128xf32>
    %42 = arith.mulf %41, %41 : vector<8x128xf32>
    %43 = arith.mulf %41, %42 : vector<8x128xf32>
    %cst_23 = arith.constant 4.471500e-02 : f32
    %44 = vector.broadcast %cst_23 : f32 to vector<8x128xf32>
    %45 = arith.mulf %44, %43 : vector<8x128xf32>
    %46 = arith.addf %41, %45 : vector<8x128xf32>
    %cst_24 = arith.constant 0.797884583 : f32
    %47 = vector.broadcast %cst_24 : f32 to vector<8x128xf32>
    %48 = arith.mulf %47, %46 : vector<8x128xf32>
    %49 = math.tanh %48 : vector<8x128xf32>
    %cst_25 = arith.constant 1.000000e+00 : f32
    %50 = vector.broadcast %cst_25 : f32 to vector<8x128xf32>
    %51 = arith.addf %50, %49 : vector<8x128xf32>
    %cst_26 = arith.constant 5.000000e-01 : f32
    %52 = vector.broadcast %cst_26 : f32 to vector<8x128xf32>
    %53 = arith.mulf %52, %51 : vector<8x128xf32>
    %54 = arith.mulf %41, %53 : vector<8x128xf32>
    %c0_27 = arith.constant 0 : index
    %c0_28 = arith.constant 0 : index
    %55 = vector.load %arg8[%c0_27, %c0_28] : memref<8x128xf32, #tpu.memory_space<vmem>>, vector<8x128xf32>
    tpu.vector_store %arg8[%c0_27, %c0_28], %54 {strides = array<i32>} : memref<8x128xf32, #tpu.memory_space<vmem>>, vector<8x128xf32>,
    return
  }
  func.func @transform_0(%arg0: i32) -> (i32, i32) {
    %c0_i32 = arith.constant 0 : i32
    %c0_i32_0 = arith.constant 0 : i32
    return %arg0, %c0_i32 : i32, i32
  }
  func.func @transform_1(%arg0: i32) -> (i32, i32) {
    %c0_i32 = arith.constant 0 : i32
    %c0_i32_0 = arith.constant 0 : i32
    %c0_i32_1 = arith.constant 0 : i32
    return %c0_i32, %c0_i32_0 : i32, i32
  }
  func.func @transform_2(%arg0: i32) -> (i32, i32) {
    %c0_i32 = arith.constant 0 : i32
    %c0_i32_0 = arith.constant 0 : i32
    %c0_i32_1 = arith.constant 0 : i32
    return %c0_i32, %c0_i32_0 : i32, i32
  }
  func.func @transform_3(%arg0: i32) -> (i32, i32) {
    %c0_i32 = arith.constant 0 : i32
    %c0_i32_0 = arith.constant 0 : i32
    %c0_i32_1 = arith.constant 0 : i32
    return %c0_i32, %c0_i32_0 : i32, i32
  }
  func.func @transform_4(%arg0: i32) -> (i32, i32) {
    %c0_i32 = arith.constant 0 : i32
    %c0_i32_0 = arith.constant 0 : i32
    %c0_i32_1 = arith.constant 0 : i32
    return %c0_i32, %c0_i32_0 : i32, i32
  }
  func.func @transform_5(%arg0: i32) -> (i32, i32) {
    %c0_i32 = arith.constant 0 : i32
    %c0_i32_0 = arith.constant 0 : i32
    %c0_i32_1 = arith.constant 0 : i32
    return %c0_i32, %c0_i32_0 : i32, i32
  }
  func.func @transform_6(%arg0: i32) -> (i32, i32) {
    %c0_i32 = arith.constant 0 : i32
    %c0_i32_0 = arith.constant 0 : i32
    %c0_i32_1 = arith.constant 0 : i32
    return %c0_i32, %c0_i32_0 : i32, i32
  }
  func.func @transform_7(%arg0: i32) -> (i32, i32) {
    %c0_i32 = arith.constant 0 : i32
    %c0_i32_0 = arith.constant 0 : i32
    return %arg0, %c0_i32 : i32, i32
  }
}

</mosaic_0001>

<bundles_post_ra>
// kernel: pose_embedder_forward.1
= control target key start
LH: loop header
LB: loop body
LE: loop exit
PB: predicated region body
PF: predicated region fallthrough
CT: control target
= control target key end

     0   :  { %v539_v0 = vmov 0.0|0.0   ;;  %vm540_vm0 = vmmov 0   ;;  %v541_v4 = vmov 0.0   ;;  %vm42_vm1 = vcmask 523264   ;;  %s740_s1 = inlined_call_operand.vmem [shape: f32[64,128], index: 1, kind: input, shape index: {}]   ;;  %s741_s3 = inlined_call_operand.vmem [shape: f32[128,128], index: 3, kind: input, shape index: {}]   ;;  %s742_s0 = inlined_call_operand.vmem [shape: f32[8,64], index: 0, kind: input, shape index: {}]   ;;  %s743_s5 = inlined_call_operand.vmem [shape: f32[128,128], index: 5, kind: input, shape index: {}]   ;;  %s744_s2 = inlined_call_operand.vmem [shape: f32[1,128], index: 2, kind: input, shape index: {}]   ;;  %s745_s4 = inlined_call_operand.vmem [shape: f32[1,128], index: 4, kind: input, shape index: {}]   ;;  %s746_s6 = inlined_call_operand.vmem [shape: f32[1,128], index: 6, kind: input, shape index: {}]   ;;  %s747_s7 = inlined_call_operand.vmem [shape: f32[8,128], index: 7, kind: output, shape index: {}]  }
   0x1   :  { %470 = vmatprep.subr.bf16.mxu0 %v539_v0  ;;  %v27_v1 = vld [vmem:[%s740_s1] sm:$0xff]  ;;  %v28_v2 = vld [vmem:[%s740_s1 + $0x8] sm:$0xff]  ;;  %v29_v3 = vld [vmem:[%s740_s1 + $0x10] sm:$0xff]  ;;  %397 = vmatprep.mubr.msk.f32.mxu0 %vm540_vm0, %v541_v4 }
   0x2   :  { %v471_v5 = vpack.c.bf16 %v28_v2, %v27_v1  ;;  %v30_v6 = vld [vmem:[%s740_s1 + $0x18] sm:$0xff]  ;;  %482 = vmatprep.subr.bf16.mxu1 %v539_v0  ;;  %432 = vmatprep.mubr.msk.f32.mxu1 %vm540_vm0, %v541_v4  ;;  %v125_v8 = vld [vmem:[%s741_s3] sm:$0xff]  ;;  %v126_v9 = vld [vmem:[%s741_s3 + $0x8] sm:$0xff] }
   0x3   :  { %v474_v7 = vpack.c.bf16 %v30_v6, %v29_v3  ;;  %v31_v10 = vld [vmem:[%s740_s1 + $0x20] sm:$0xff]  ;;  %v32_v11 = vld [vmem:[%s740_s1 + $0x28] sm:$0xff]  ;;  %v483_v12 = vpack.c.bf16 %v126_v9, %v125_v8  ;;  %v33_v14 = vld [vmem:[%s740_s1 + $0x30] sm:$0xff] }
   0x4   :  { %472 = vmatpush3.bf16.msra.mxu0 %v471_v5  ;;  %v477_v13 = vpack.c.bf16 %v32_v11, %v31_v10  ;;  %v34_v15 = vld [vmem:[%s740_s1 + $0x38] sm:$0xff]  ;;  %v26_v17 = vld [vmem:[%s742_s0] sm:$0xff]  ;;  %v127_v18 = vld [vmem:[%s741_s3 + $0x10] sm:$0xff] }
   0x5   :  { %473 = vmatprep.subr.bf16.mxu0 %v539_v0  ;;  %484 = vmatpush3.bf16.msra.mxu1 %v483_v12  ;;  %v480_v16 = vpack.c.bf16 %v34_v15, %v33_v14  ;;  %v128_v19 = vld [vmem:[%s741_s3 + $0x18] sm:$0xff]  ;;  %v129_v21 = vld [vmem:[%s741_s3 + $0x20] sm:$0xff]  ;;  %v130_v22 = vld [vmem:[%s741_s3 + $0x28] sm:$0xff] }
   0x6   :  { %485 = vmatprep.subr.bf16.mxu1 %v539_v0  ;;  %v486_v20 = vpack.c.bf16 %v128_v19, %v127_v18  ;;  %v489_v23 = vpack.c.bf16 %v130_v22, %v129_v21  ;;  %v131_v24 = vld [vmem:[%s741_s3 + $0x30] sm:$0xff]  ;;  %v132_v25 = vld [vmem:[%s741_s3 + $0x38] sm:$0xff]  ;;  %v133_v27 = vld [vmem:[%s741_s3 + $0x40] sm:$0xff] }
   0x7   :  { %v492_v26 = vpack.c.bf16 %v132_v25, %v131_v24  ;;  %v134_v28 = vld [vmem:[%s741_s3 + $0x48] sm:$0xff]  ;;  %v135_v30 = vld [vmem:[%s741_s3 + $0x50] sm:$0xff]  ;;  %v136_v31 = vld [vmem:[%s741_s3 + $0x58] sm:$0xff] }
   0x8   :  { %475 = vmatpush3.bf16.msra.mxu0 %v474_v7  ;;  %v495_v29 = vpack.c.bf16 %v134_v28, %v133_v27  ;;  %v498_v32 = vpack.c.bf16 %v136_v31, %v135_v30  ;;  %v137_v33 = vld [vmem:[%s741_s3 + $0x60] sm:$0xff]  ;;  %v138_v34 = vld [vmem:[%s741_s3 + $0x68] sm:$0xff]  ;;  %v139_v36 = vld [vmem:[%s741_s3 + $0x70] sm:$0xff] }
   0x9   :  { %476 = vmatprep.subr.bf16.mxu0 %v539_v0  ;;  %487 = vmatpush3.bf16.msra.mxu1 %v486_v20  ;;  %v501_v35 = vpack.c.bf16 %v138_v34, %v137_v33  ;;  %v140_v37 = vld [vmem:[%s741_s3 + $0x78] sm:$0xff]  ;;  %v227_v39 = vld [vmem:[%s743_s5] sm:$0xff]  ;;  %v228_v40 = vld [vmem:[%s743_s5 + $0x8] sm:$0xff] }
   0xa   :  { %488 = vmatprep.subr.bf16.mxu1 %v539_v0  ;;  %v504_v38 = vpack.c.bf16 %v140_v37, %v139_v36  ;;  %v507_v41 = vpack.c.bf16 %v228_v40, %v227_v39  ;;  %v334_v42 = vld [vmem:[%s744_s2] ss:$0 sm:$0xff]  ;;  %v229_v55 = vld [vmem:[%s743_s5 + $0x10] sm:$0xff]  ;;  %v230_v56 = vld [vmem:[%s743_s5 + $0x18] sm:$0xff] }
   0xb   :  { %v510_v57 = vpack.c.bf16 %v230_v56, %v229_v55  ;;  %v231_v58 = vld [vmem:[%s743_s5 + $0x20] sm:$0xff]  ;;  %v232_v59 = vld [vmem:[%s743_s5 + $0x28] sm:$0xff]  ;;  %v233_v61 = vld [vmem:[%s743_s5 + $0x30] sm:$0xff] }
   0xc   :  { %478 = vmatpush3.bf16.msra.mxu0 %v477_v13  ;;  %v513_v60 = vpack.c.bf16 %v232_v59, %v231_v58  ;;  %v234_v62 = vld [vmem:[%s743_s5 + $0x38] sm:$0xff]  ;;  %v235_v1 = vld [vmem:[%s743_s5 + $0x40] sm:$0xff]  ;;  %v236_v2 = vld [vmem:[%s743_s5 + $0x48] sm:$0xff] }
   0xd   :  { %479 = vmatprep.subr.bf16.mxu0 %v539_v0  ;;  %490 = vmatpush3.bf16.msra.mxu1 %v489_v23  ;;  %v516_v63 = vpack.c.bf16 %v234_v62, %v233_v61  ;;  %v519_v3 = vpack.c.bf16 %v236_v2, %v235_v1  ;;  %v238_v5 = vld [vmem:[%s743_s5 + $0x58] sm:$0xff]  ;;  %v239_v7 = vld [vmem:[%s743_s5 + $0x60] sm:$0xff]  ;;  %v240_v8 = vld [vmem:[%s743_s5 + $0x68] sm:$0xff] }
   0xe   :  { %491 = vmatprep.subr.bf16.mxu1 %v539_v0  ;;  %v525_v9 = vpack.c.bf16 %v240_v8, %v239_v7  ;;  %v241_v10 = vld [vmem:[%s743_s5 + $0x70] sm:$0xff]  ;;  %v242_v11 = vld [vmem:[%s743_s5 + $0x78] sm:$0xff]  ;;  %v336_v13 = vld [vmem:[%s745_s4] ss:$0 sm:$0xff] }
   0xf   :  { %v528_v12 = vpack.c.bf16 %v242_v11, %v241_v10 }
  0x10   :  { %481 = vmatpush3.bf16.msra.mxu0 %v480_v16 }
  0x11   :  { %506 = vmatprep.subr.bf16.mxu0 %v539_v0  ;;  %493 = vmatpush3.bf16.msra.mxu1 %v492_v26 }
  0x12   :  { %494 = vmatprep.subr.bf16.mxu1 %v539_v0 }
  0x13   :  { %398 = vmatmul.mubr.msk.f32.vlgmr.msra.gmra.mrb[0].mxu0 %vm42_vm1, %v26_v17 }
  0x14   :  { %467 = vmatprep.mubr.msk.f32.mxu0 %vm540_vm0, %v541_v4  ;;  %508 = vmatpush3.bf16.msra.mxu0 %v507_v41  ;;  %v237_v4 = vld [vmem:[%s743_s5 + $0x50] sm:$0xff] }
  0x15   :  { %496 = vmatpush3.bf16.msra.mxu1 %v495_v29  ;;  %509 = vmatprep.subr.bf16.mxu0 %v539_v0  ;;  %v522_v6 = vpack.c.bf16 %v238_v5, %v237_v4 }
  0x16   :  { %497 = vmatprep.subr.bf16.mxu1 %v539_v0 }
  0x18   :  { %511 = vmatpush3.bf16.msra.mxu0 %v510_v57 }
  0x19   :  { %499 = vmatpush3.bf16.msra.mxu1 %v498_v32  ;;  %512 = vmatprep.subr.bf16.mxu0 %v539_v0 }
  0x1a   :  { %500 = vmatprep.subr.bf16.mxu1 %v539_v0 }
  0x1c   :  { %514 = vmatpush3.bf16.msra.mxu0 %v513_v60 }
  0x1d   :  { %502 = vmatpush3.bf16.msra.mxu1 %v501_v35  ;;  %515 = vmatprep.subr.bf16.mxu0 %v539_v0 }
  0x1e   :  { %503 = vmatprep.subr.bf16.mxu1 %v539_v0 }
  0x20   :  { %517 = vmatpush3.bf16.msra.mxu0 %v516_v63 }
  0x21   :  { %505 = vmatpush3.bf16.msra.mxu1 %v504_v38  ;;  %518 = vmatprep.subr.bf16.mxu0 %v539_v0 }
  0x24   :  { %520 = vmatpush3.bf16.msra.mxu0 %v519_v3 }
  0x25   :  { %521 = vmatprep.subr.bf16.mxu0 %v539_v0 }
  0x28   :  { %523 = vmatpush3.bf16.msra.mxu0 %v522_v6 }
  0x29   :  { %524 = vmatprep.subr.bf16.mxu0 %v539_v0 }
  0x2c   :  { %526 = vmatpush3.bf16.msra.mxu0 %v525_v9 }
  0x2d   :  { %527 = vmatprep.subr.bf16.mxu0 %v539_v0  ;;  %v337_v0 = vld [vmem:[%s746_s6] ss:$0 sm:$0xff] }
  0x30   :  { %529 = vmatpush3.bf16.msra.mxu0 %v528_v12 }
  0xe6   :  { %v112_v43 = vpop.f32.mrb[0].mxu0 }
  0xe7   :  { %v113_v44 = vadd.f32 %v334_v42, %v112_v43  ;;  %v399_v45 = vpop.f32.mrb[1].mxu0 }
  0xe9   :  { %v116_v46 = vmul.f32 %v113_v44, %v113_v44 }
  0xeb   :  { %v117_v47 = vmul.f32 %v116_v46, %v113_v44 }
  0xed   :  { %v118_v48 = vmul.f32 0.044715, %v117_v47 }
  0xef   :  { %v119_v49 = vadd.f32 %v118_v48, %v113_v44 }
  0xf1   :  { %v120_v50 = vmul.f32 0.7978846, %v119_v49 }
  0xf3   :  { %533 = vtanh.f32 %v120_v50 }
  0xfd   :  { %v534_v51 = vpop.eup %533 }
  0xfe   :  { %v122_v52 = vadd.f32 1.0, %v534_v51 }
 0x100   :  { %v123_v53 = vmul.f32 0.5, %v122_v52 }
 0x102   :  { %v124_v54 = vmul.f32 %v123_v53, %v113_v44 }
 0x104   :  { %433 = vmatmul.mubr.f32.vlgmr.msra.gmra.mrb[0].mxu1 %v124_v54 }
 0x1d7   :  { %v214_v14 = vpop.f32.mrb[0].mxu1 }
 0x1d8   :  { %v215_v15 = vadd.f32 %v336_v13, %v214_v14  ;;  %v434_v16 = vpop.f32.mrb[1].mxu1 }
 0x1da   :  { %v218_v17 = vmul.f32 %v215_v15, %v215_v15 }
 0x1dc   :  { %v219_v18 = vmul.f32 %v218_v17, %v215_v15 }
 0x1de   :  { %v220_v19 = vmul.f32 0.044715, %v219_v18 }
 0x1e0   :  { %v221_v20 = vadd.f32 %v220_v19, %v215_v15 }
 0x1e2   :  { %v222_v21 = vmul.f32 0.7978846, %v221_v20 }
 0x1e4   :  { %535 = vtanh.f32 %v222_v21 }
 0x1ee   :  { %v536_v22 = vpop.eup %535 }
 0x1ef   :  { %v224_v23 = vadd.f32 1.0, %v536_v22 }
 0x1f1   :  { %v225_v24 = vmul.f32 0.5, %v224_v23 }
 0x1f3   :  { %v226_v25 = vmul.f32 %v225_v24, %v215_v15 }
 0x1f5   :  { %468 = vmatmul.mubr.f32.vlgmr.msra.gmra.mrb[2].mxu0 %v226_v25 }
 0x2c8   :  { %v316_v26 = vpop.f32.mrb[2].mxu0 }
 0x2c9   :  { %v317_v27 = vadd.f32 %v337_v0, %v316_v26  ;;  %v469_v28 = vpop.f32.mrb[3].mxu0 }
 0x2cb   :  { %v320_v29 = vmul.f32 %v317_v27, %v317_v27 }
 0x2cd   :  { %v321_v30 = vmul.f32 %v320_v29, %v317_v27 }
 0x2cf   :  { %v322_v31 = vmul.f32 0.044715, %v321_v30 }
 0x2d1   :  { %v323_v32 = vadd.f32 %v322_v31, %v317_v27 }
 0x2d3   :  { %v324_v33 = vmul.f32 0.7978846, %v323_v32 }
 0x2d5   :  { %537 = vtanh.f32 %v324_v33 }
 0x2df   :  { %v538_v34 = vpop.eup %537 }
 0x2e0   :  { %v326_v35 = vadd.f32 1.0, %v538_v34 }
 0x2e2   :  { %v327_v36 = vmul.f32 0.5, %v326_v35 }
 0x2e4   :  { %v328_v37 = vmul.f32 %v327_v36, %v317_v27 }
 0x2e6   :  { %329 = vst [vmem:[%s747_s7] sm:$0xff] %v328_v37 }

</bundles_post_ra>
